<compile_context>
chip_gen: v7x
topology: tpu7x:2x2x1
jax: 0.10.0
libtpu: 0.0.40
codegen_flags: <defaults>
</compile_context>

<pallas_src>
import functools

import jax
import jax.numpy as jnp
from jax.experimental import pallas as pl
from jax.experimental.pallas import tpu as pltpu

_LANE = 128


def _round_up(x, m):
    return -(-x // m) * m


def _residual_dynamics_kernel(x_ref, w1_ref, b1_ref, w2_ref, b2_ref,
                              w3_ref, b3_ref, out_ref, *, state_dim):
    # x_ref: (Fp, TB) packed [state | action | zero-pad] features, batch on lanes.
    x = x_ref[...]

    # Layer 1: single packed matmul (Hp, Fp) @ (Fp, TB) -> (Hp, TB), f32 accum.
    h1 = jnp.dot(w1_ref[...], x, preferred_element_type=jnp.float32) + b1_ref[...]
    h1 = jnp.maximum(h1, 0.0)

    # Layer 2: (Hp, Hp) @ (Hp, TB) — the only "real" MXU work.
    h2 = jnp.dot(w2_ref[...], h1, preferred_element_type=jnp.float32) + b2_ref[...]
    h2 = jnp.maximum(h2, 0.0)

    # Layer 3: (Sp, Hp) @ (Hp, TB) -> (Sp, TB) residual delta.
    delta = jnp.dot(w3_ref[...], h2, preferred_element_type=jnp.float32) + b3_ref[...]

    # Residual add: state lives in rows [0, state_dim) of the packed input;
    # mask off the action / padding rows (cheap VPU select, lane-dense store).
    sp, tb = out_ref.shape
    row = jax.lax.broadcasted_iota(jnp.int32, (sp, tb), 0)
    state_rows = jnp.where(row < state_dim, x[:sp, :], 0.0)
    out_ref[...] = state_rows + delta


def residual_dynamics_forward(params, state, action, *, tile_b=1024):
    """next_state = state + MLP([state, action]); supports (..., dim) inputs."""
    w1t, b1, w2t, b2, w3t, b3 = params
    S = state.shape[-1]
    A = action.shape[-1]
    Hp = w2t.shape[0]          # padded hidden (128)
    Fp = w1t.shape[1]          # padded in-features (multiple of 8)
    Sp = w3t.shape[0]          # padded out-features (multiple of 8)
    lead = state.shape[:-1]

    s2 = state.reshape(-1, S).astype(jnp.float32)
    a2 = action.reshape(-1, A).astype(jnp.float32)
    B = s2.shape[0]

    # Lane-multiple batch tile.  Keep >= 2 grid steps when the padded batch
    # allows it (v7x megacore: ("parallel",) axis shards across both TCs;
    # measured ~neutral on single-TC v5e/v6e).  Tiny batches -> one grid step.
    n_blocks = _round_up(B, _LANE) // _LANE
    tiles_cap = max(1, tile_b // _LANE)
    if n_blocks <= 1:
        blocks_per_tile = 1
    else:
        blocks_per_tile = min(tiles_cap, -(-n_blocks // 2))
    TB = blocks_per_tile * _LANE
    Bp = _round_up(B, TB)
    grid = (Bp // TB,)

    # Pack [state | action], zero-pad features + batch, flip to batch-on-lanes.
    x = jnp.concatenate([s2, a2], axis=-1)
    x = jnp.pad(x, ((0, Bp - B), (0, Fp - (S + A))))
    xt = x.T                                               # (Fp, Bp)

    flops = 2 * Bp * (Fp * Hp + Hp * Hp + Hp * Sp)
    bytes_accessed = 4 * (Fp * Bp + Sp * Bp
                          + Fp * Hp + Hp * Hp + Hp * Sp + 2 * Hp + Sp)

    out = pl.pallas_call(
        functools.partial(_residual_dynamics_kernel, state_dim=S),
        out_shape=jax.ShapeDtypeStruct((Sp, Bp), jnp.float32),
        grid_spec=pltpu.PrefetchScalarGridSpec(
            num_scalar_prefetch=0,
            grid=grid,
            in_specs=[
                pl.BlockSpec((Fp, TB), lambda i: (0, i)),   # packed input tile
                pl.BlockSpec((Hp, Fp), lambda i: (0, 0)),   # w1^T (resident)
                pl.BlockSpec((Hp, 1), lambda i: (0, 0)),    # b1
                pl.BlockSpec((Hp, Hp), lambda i: (0, 0)),   # w2^T
                pl.BlockSpec((Hp, 1), lambda i: (0, 0)),    # b2
                pl.BlockSpec((Sp, Hp), lambda i: (0, 0)),   # w3^T
                pl.BlockSpec((Sp, 1), lambda i: (0, 0)),    # b3
            ],
            out_specs=pl.BlockSpec((Sp, TB), lambda i: (0, i)),
        ),
        compiler_params=pltpu.CompilerParams(
            dimension_semantics=("parallel",),              # megacore on v7x
            vmem_limit_bytes=32 * 1024 * 1024,              # far above actual use
        ),
        cost_estimate=pl.CostEstimate(flops=flops, transcendentals=0,
                                      bytes_accessed=bytes_accessed),
    )(xt, w1t, b1, w2t, b2, w3t, b3)

    return out.T[:B, :S].reshape(*lead, S)


def init_params(key, state_dim, action_dim, hidden=100):
    """PyTorch-Linear-style init (f32).  Returns (packed kernel params, raw params).

    Kernel params are transposed (out, in) and zero-padded: hidden -> 128,
    in-features -> multiple of 8, out-features -> multiple of 8, biases (out, 1).
    """
    ks = jax.random.split(key, 6)
    in_dim = state_dim + action_dim
    Fp = _round_up(in_dim, 8)
    Hp = _round_up(hidden, _LANE)
    Sp = _round_up(state_dim, 8)

    def lin(kw, kb, fan_in, fan_out):
        bound = 1.0 / (fan_in ** 0.5)
        w = jax.random.uniform(kw, (fan_in, fan_out), jnp.float32, -bound, bound)
        b = jax.random.uniform(kb, (fan_out,), jnp.float32, -bound, bound)
        return w, b

    w1, b1 = lin(ks[0], ks[1], in_dim, hidden)
    w2, b2 = lin(ks[2], ks[3], hidden, hidden)
    w3, b3 = lin(ks[4], ks[5], hidden, state_dim)

    w1t = jnp.zeros((Hp, Fp), jnp.float32).at[:hidden, :in_dim].set(w1.T)
    b1p = jnp.zeros((Hp, 1), jnp.float32).at[:hidden, 0].set(b1)
    w2t = jnp.zeros((Hp, Hp), jnp.float32).at[:hidden, :hidden].set(w2.T)
    b2p = jnp.zeros((Hp, 1), jnp.float32).at[:hidden, 0].set(b2)
    w3t = jnp.zeros((Sp, Hp), jnp.float32).at[:state_dim, :hidden].set(w3.T)
    b3p = jnp.zeros((Sp, 1), jnp.float32).at[:state_dim, 0].set(b3)

    packed = (w1t, b1p, w2t, b2p, w3t, b3p)
    raw = (w1, b1, w2, b2, w3, b3)
    return packed, raw


def _reference_forward(raw_params, state, action):
    """Pure-JAX f32 reference matching the PyTorch module."""
    w1, b1, w2, b2, w3, b3 = raw_params
    s = state.astype(jnp.float32)
    a = action.astype(jnp.float32)
    x = jnp.concatenate([s, a], axis=-1)
    h1 = jnp.maximum(x @ w1 + b1, 0.0)
    h2 = jnp.maximum(h1 @ w2 + b2, 0.0)
    return s + (h2 @ w3 + b3)


if __name__ == "__main__":
    key = jax.random.PRNGKey(0)
    k_param, k_s1, k_a1, k_s2, k_a2 = jax.random.split(key, 5)

    state_dim, action_dim, hidden = 3, 3, 100
    packed, raw = init_params(k_param, state_dim, action_dim, hidden)

    # Test 1: small batch (single grid step path).
    state1 = jax.random.normal(k_s1, (20, state_dim), jnp.float32)
    action1 = jax.random.normal(k_a1, (20, action_dim), jnp.float32)
    out1 = residual_dynamics_forward(packed, state1, action1)
    jax.block_until_ready(out1)
    ref1 = _reference_forward(raw, state1, action1)
    assert out1.shape == (20, state_dim), out1.shape
    assert jnp.allclose(out1, ref1, rtol=1e-3, atol=1e-3)

    # Test 2: leading dims + multi-step pipelined grid (B=300 -> TB=256, grid=(2,)).
    state2 = jax.random.normal(k_s2, (2, 150, state_dim), jnp.float32)
    action2 = jax.random.normal(k_a2, (2, 150, action_dim), jnp.float32)
    out2 = residual_dynamics_forward(packed, state2, action2)
    jax.block_until_ready(out2)
    ref2 = _reference_forward(raw, state2, action2)
    assert out2.shape == (2, 150, state_dim), out2.shape
    assert jnp.allclose(out2, ref2, rtol=1e-3, atol=1e-3)

    print("KERNEL_OK")
</pallas_src>

<mosaic_0001>
module attributes {stable_mosaic.version = 11 : i64} {
  func.func @_residual_dynamics_kernel(%arg0: i32, %arg1: memref<8x128xf32, #tpu.memory_space<vmem>>, %arg2: memref<128x8xf32, #tpu.memory_space<vmem>>, %arg3: memref<128x1xf32, #tpu.memory_space<vmem>>, %arg4: memref<128x128xf32, #tpu.memory_space<vmem>>, %arg5: memref<128x1xf32, #tpu.memory_space<vmem>>, %arg6: memref<8x128xf32, #tpu.memory_space<vmem>>, %arg7: memref<8x1xf32, #tpu.memory_space<vmem>>, %arg8: memref<8x128xf32, #tpu.memory_space<vmem>>) attributes {dimension_semantics = [#tpu.dimension_semantics<parallel>], iteration_bounds = array<i64: 1>, scalar_prefetch = 0 : i64, scratch_operands = 0 : i64, tpu.core_type = #tpu.core_type<tc>, window_params = [{transform_indices = @transform_0, window_bounds = array<i64: 8, 128>}, {pipeline_mode = #tpu.pipeline_mode<synchronous>, transform_indices = @transform_1, window_bounds = array<i64: 128, 8>}, {pipeline_mode = #tpu.pipeline_mode<synchronous>, transform_indices = @transform_2, window_bounds = array<i64: 128, 1>}, {pipeline_mode = #tpu.pipeline_mode<synchronous>, transform_indices = @transform_3, window_bounds = array<i64: 128, 128>}, {pipeline_mode = #tpu.pipeline_mode<synchronous>, transform_indices = @transform_4, window_bounds = array<i64: 128, 1>}, {pipeline_mode = #tpu.pipeline_mode<synchronous>, transform_indices = @transform_5, window_bounds = array<i64: 8, 128>}, {pipeline_mode = #tpu.pipeline_mode<synchronous>, transform_indices = @transform_6, window_bounds = array<i64: 8, 1>}, {transform_indices = @transform_7, window_bounds = array<i64: 8, 128>}]} {
    %c0 = arith.constant 0 : index
    %c0_0 = arith.constant 0 : index
    %0 = vector.load %arg1[%c0, %c0_0] : memref<8x128xf32, #tpu.memory_space<vmem>>, vector<8x128xf32>
    %c0_1 = arith.constant 0 : index
    %c0_2 = arith.constant 0 : index
    %1 = vector.load %arg2[%c0_1, %c0_2] : memref<128x8xf32, #tpu.memory_space<vmem>>, vector<128x8xf32>
    %cst = arith.constant dense<0.000000e+00> : vector<128x128xf32>
    %2 = tpu.matmul %1, %0, %cst {dimension_numbers = #tpu.dot_dimension_numbers<[1], [0], [0], [1], [0, 0, 1, 1], [], []>} : vector<128x8xf32>, vector<8x128xf32>, vector<128x128xf32> -> vector<128x128xf32>
    %c0_3 = arith.constant 0 : index
    %c0_4 = arith.constant 0 : index
    %3 = vector.load %arg3[%c0_3, %c0_4] : memref<128x1xf32, #tpu.memory_space<vmem>>, vector<128x1xf32>
    %4 = vector.broadcast %3 : vector<128x1xf32> to vector<128x128xf32>
    %5 = arith.addf %2, %4 : vector<128x128xf32>
    %cst_5 = arith.constant 0.000000e+00 : f32
    %6 = vector.broadcast %cst_5 : f32 to vector<128x128xf32>
    %7 = arith.maximumf %5, %6 : vector<128x128xf32>
    %c0_6 = arith.constant 0 : index
    %c0_7 = arith.constant 0 : index
    %8 = vector.load %arg4[%c0_6, %c0_7] : memref<128x128xf32, #tpu.memory_space<vmem>>, vector<128x128xf32>
    %cst_8 = arith.constant dense<0.000000e+00> : vector<128x128xf32>
    %9 = tpu.matmul %8, %7, %cst_8 {dimension_numbers = #tpu.dot_dimension_numbers<[1], [0], [0], [1], [0, 0, 1, 1], [], []>} : vector<128x128xf32>, vector<128x128xf32>, vector<128x128xf32> -> vector<128x128xf32>
    %c0_9 = arith.constant 0 : index
    %c0_10 = arith.constant 0 : index
    %10 = vector.load %arg5[%c0_9, %c0_10] : memref<128x1xf32, #tpu.memory_space<vmem>>, vector<128x1xf32>
    %11 = vector.broadcast %10 : vector<128x1xf32> to vector<128x128xf32>
    %12 = arith.addf %9, %11 : vector<128x128xf32>
    %cst_11 = arith.constant 0.000000e+00 : f32
    %13 = vector.broadcast %cst_11 : f32 to vector<128x128xf32>
    %14 = arith.maximumf %12, %13 : vector<128x128xf32>
    %c0_12 = arith.constant 0 : index
    %c0_13 = arith.constant 0 : index
    %15 = vector.load %arg6[%c0_12, %c0_13] : memref<8x128xf32, #tpu.memory_space<vmem>>, vector<8x128xf32>
    %cst_14 = arith.constant dense<0.000000e+00> : vector<8x128xf32>
    %16 = tpu.matmul %15, %14, %cst_14 {dimension_numbers = #tpu.dot_dimension_numbers<[1], [0], [0], [1], [0, 0, 1, 1], [], []>} : vector<8x128xf32>, vector<128x128xf32>, vector<8x128xf32> -> vector<8x128xf32>
    %c0_15 = arith.constant 0 : index
    %c0_16 = arith.constant 0 : index
    %17 = vector.load %arg7[%c0_15, %c0_16] : memref<8x1xf32, #tpu.memory_space<vmem>>, vector<8x1xf32>
    %18 = vector.broadcast %17 : vector<8x1xf32> to vector<8x128xf32>
    %19 = arith.addf %16, %18 : vector<8x128xf32>
    %20 = tpu.iota {dimensions = array<i32: 0>} : vector<8x128xi32>
    %c3_i32 = arith.constant 3 : i32
    %21 = vector.broadcast %c3_i32 : i32 to vector<8x128xi32>
    %22 = arith.cmpi slt, %20, %21 : vector<8x128xi32>
    %cst_17 = arith.constant 0.000000e+00 : f32
    %23 = vector.broadcast %cst_17 : f32 to vector<8x128xf32>
    %24 = arith.select %22, %0, %23 : vector<8x128xi1>, vector<8x128xf32>
    %25 = arith.addf %24, %19 : vector<8x128xf32>
    %c0_18 = arith.constant 0 : index
    %c0_19 = arith.constant 0 : index
    %26 = vector.load %arg8[%c0_18, %c0_19] : memref<8x128xf32, #tpu.memory_space<vmem>>, vector<8x128xf32>
    tpu.vector_store %arg8[%c0_18, %c0_19], %25 {strides = array<i32>} : memref<8x128xf32, #tpu.memory_space<vmem>>, vector<8x128xf32>,
    return
  }
  func.func @transform_0(%arg0: i32) -> (i32, i32) {
    %c0_i32 = arith.constant 0 : i32
    %c0_i32_0 = arith.constant 0 : i32
    return %c0_i32, %arg0 : i32, i32
  }
  func.func @transform_1(%arg0: i32) -> (i32, i32) {
    %c0_i32 = arith.constant 0 : i32
    %c0_i32_0 = arith.constant 0 : i32
    %c0_i32_1 = arith.constant 0 : i32
    return %c0_i32, %c0_i32_0 : i32, i32
  }
  func.func @transform_2(%arg0: i32) -> (i32, i32) {
    %c0_i32 = arith.constant 0 : i32
    %c0_i32_0 = arith.constant 0 : i32
    %c0_i32_1 = arith.constant 0 : i32
    return %c0_i32, %c0_i32_0 : i32, i32
  }
  func.func @transform_3(%arg0: i32) -> (i32, i32) {
    %c0_i32 = arith.constant 0 : i32
    %c0_i32_0 = arith.constant 0 : i32
    %c0_i32_1 = arith.constant 0 : i32
    return %c0_i32, %c0_i32_0 : i32, i32
  }
  func.func @transform_4(%arg0: i32) -> (i32, i32) {
    %c0_i32 = arith.constant 0 : i32
    %c0_i32_0 = arith.constant 0 : i32
    %c0_i32_1 = arith.constant 0 : i32
    return %c0_i32, %c0_i32_0 : i32, i32
  }
  func.func @transform_5(%arg0: i32) -> (i32, i32) {
    %c0_i32 = arith.constant 0 : i32
    %c0_i32_0 = arith.constant 0 : i32
    %c0_i32_1 = arith.constant 0 : i32
    return %c0_i32, %c0_i32_0 : i32, i32
  }
  func.func @transform_6(%arg0: i32) -> (i32, i32) {
    %c0_i32 = arith.constant 0 : i32
    %c0_i32_0 = arith.constant 0 : i32
    %c0_i32_1 = arith.constant 0 : i32
    return %c0_i32, %c0_i32_0 : i32, i32
  }
  func.func @transform_7(%arg0: i32) -> (i32, i32) {
    %c0_i32 = arith.constant 0 : i32
    %c0_i32_0 = arith.constant 0 : i32
    return %c0_i32, %arg0 : i32, i32
  }
}

</mosaic_0001>

<bundles_post_ra>
// kernel: tpu_custom_call.1
= control target key start
LH: loop header
LB: loop body
LE: loop exit
PB: predicated region body
PF: predicated region fallthrough
CT: control target
= control target key end

     0   :  { %vm140_vm0 = vcmask 64512   ;;  %v1006_v4 = vmov 0   ;;  %s1293_s0 = inlined_call_operand.vmem [shape: f32[8,128], index: 0, kind: input, shape index: {}]   ;;  %s1294_s1 = inlined_call_operand.vmem [shape: f32[128,8], index: 1, kind: input, shape index: {}]   ;;  %s1295_s2 = inlined_call_operand.vmem [shape: f32[128,1], index: 2, kind: input, shape index: {}]   ;;  %s1296_s3 = inlined_call_operand.vmem [shape: f32[128,128], index: 3, kind: input, shape index: {}]   ;;  %s1297_s4 = inlined_call_operand.vmem [shape: f32[128,1], index: 4, kind: input, shape index: {}]   ;;  %s1298_s5 = inlined_call_operand.vmem [shape: f32[8,128], index: 5, kind: input, shape index: {}]   ;;  %s1299_s6 = inlined_call_operand.vmem [shape: f32[8,1], index: 6, kind: input, shape index: {}]   ;;  %s1300_s7 = inlined_call_operand.hbm [shape: f32[8,128], index: 7, kind: output, shape index: {}]  }
   0x1   :  { %v1054_v0 = vld [vmem:[%s1293_s0] sm:$0xff]  ;;  %v29_v2 = vld [vmem:[%s1294_s1 + $0x8] sm:$0xff]  ;;  %v30_v3 = vld [vmem:[%s1294_s1 + $0x10] sm:$0xff]  ;;  %980 = vset.pattern.permute.xlu0 %v1006_v4  ;;  %981 = vset.pattern.permute.xlu1 %v1006_v4 }
   0x2   :  { %v28_v1 = vld [vmem:[%s1294_s1] sm:$0xff]  ;;  %802 = vmatprep.subr.mxu0 %v1054_v0  ;;  %v31_v6 = vld [vmem:[%s1294_s1 + $0x18] sm:$0xff]  ;;  %v45_v8 = vld [vmem:[%s1295_s2 + $0x8] sm:$0xff] }
   0x3   :  { %804 = vmatprep.mubr.msk.f32.mxu0 %vm140_vm0, %v28_v1  ;;  %803 = vmatpush3.msra.mxu0 %v1054_v0  ;;  %v44_v5 = vld [vmem:[%s1295_s2] sm:$0xff]  ;;  %v46_v9 = vld [vmem:[%s1295_s2 + $0x10] sm:$0xff]  ;;  %v47_v10 = vld [vmem:[%s1295_s2 + $0x18] sm:$0xff] }
   0x4   :  { %805 = vmatmul.mubr.msk.f32.vlgmr.msra.gmra.mrb[0].mxu0 %vm140_vm0, %v29_v2  ;;  %62 = vperm.xlu0 %980, %v44_v5   ;;  %v32_v7 = vld [vmem:[%s1294_s1 + $0x20] sm:$0xff]  ;;  %v33_v11 = vld [vmem:[%s1294_s1 + $0x28] sm:$0xff]  ;;  %v34_v12 = vld [vmem:[%s1294_s1 + $0x30] sm:$0xff] }
   0x5   :  { %807 = vmatprep.mubr.msk.f32.mxu0 %vm140_vm0, %v30_v3  ;;  %72 = vperm.xlu1 %981, %v46_v9   ;;  %v48_v13 = vld [vmem:[%s1295_s2 + $0x20] sm:$0xff]  ;;  %v49_v14 = vld [vmem:[%s1295_s2 + $0x28] sm:$0xff]  ;;  %v35_v15 = vld [vmem:[%s1294_s1 + $0x38] sm:$0xff] }
   0x6   :  { %v36_v16 = vld [vmem:[%s1294_s1 + $0x40] sm:$0xff]  ;;  %v50_v17 = vld [vmem:[%s1295_s2 + $0x30] sm:$0xff]  ;;  %v51_v18 = vld [vmem:[%s1295_s2 + $0x38] sm:$0xff] }
   0x7   :  { %v37_v19 = vld [vmem:[%s1294_s1 + $0x48] sm:$0xff] }
   0x8   :  { %808 = vmatmul.mubr.msk.f32.gmra.mrb[2].mxu0 %vm140_vm0, %v31_v6  ;;  %67 = vperm.xlu0 %980, %v45_v8  }
   0x9   :  { %810 = vmatprep.mubr.msk.f32.mxu0 %vm140_vm0, %v32_v7  ;;  %77 = vperm.xlu1 %981, %v47_v10  }
   0xc   :  { %811 = vmatmul.mubr.msk.f32.gmra.mrb[4].mxu0 %vm140_vm0, %v33_v11  ;;  %82 = vperm.xlu0 %980, %v48_v13  }
   0xd   :  { %813 = vmatprep.mubr.msk.f32.mxu0 %vm140_vm0, %v34_v12  ;;  %87 = vperm.xlu1 %981, %v49_v14  }
  0x10   :  { %814 = vmatmul.mubr.msk.f32.gmra.mrb[6].mxu0 %vm140_vm0, %v35_v15  ;;  %92 = vperm.xlu0 %980, %v50_v17  }
  0x11   :  { %816 = vmatprep.mubr.msk.f32.mxu0 %vm140_vm0, %v36_v16 }
  0x12   :  { %12 = vsyncpa [#allocation3], 0  ;;  %v38_v20 = vld [vmem:[%s1294_s1 + $0x50] sm:$0xff]  ;;  %v52_v21 = vld [vmem:[%s1295_s2 + $0x40] sm:$0xff]  ;;  %97 = vperm.xlu1 %981, %v51_v18   ;;  %vm1008_vm1 = vmmov 0   ;;  %s1010_s27 = smov [#allocation2]  }
  0x13   :  { %v53_v22 = vld [vmem:[%s1295_s2 + $0x48] sm:$0xff]  ;;  %v39_v23 = vld [vmem:[%s1294_s1 + $0x58] sm:$0xff]  ;;  %v40_v24 = vld [vmem:[%s1294_s1 + $0x60] sm:$0xff]  ;;  %s712_s28 = sshll.u32 %s1010_s27, 4  ;;  %s713_s28 = int_to_ptr.vmem [resolvable:$true] %s712_s28 }
  0x14   :  { %817 = vmatmul.mubr.msk.f32.gmra.mrb[8].mxu0 %vm140_vm0, %v37_v19  ;;  %102 = vperm.xlu0 %980, %v52_v21   ;;  %v54_v25 = vld [vmem:[%s1295_s2 + $0x50] sm:$0xff]  ;;  %v55_v26 = vld [vmem:[%s1295_s2 + $0x58] sm:$0xff]  ;;  %v41_v27 = vld [vmem:[%s1294_s1 + $0x68] sm:$0xff]  ;;  %s982_s29 = scalar_lea.vmem %s713_s28, 128  ;;  %p987_p1 = scmp.lt.s32.totalorder %s713_s28, %s713_s28 }
  0x15   :  { %819 = vmatprep.mubr.msk.f32.mxu0 %vm140_vm0, %v38_v20  ;;  %v42_v28 = vld [vmem:[%s1294_s1 + $0x70] sm:$0xff]  ;;  %v56_v29 = vld [vmem:[%s1295_s2 + $0x60] sm:$0xff]  ;;  %v57_v30 = vld [vmem:[%s1295_s2 + $0x68] sm:$0xff]  ;;  %p983_p0 = scmp.ne.s32.totalorder %s713_s28, %s982_s29  ;;  %p988_p2 = scmp.lt.s32.totalorder %s982_s29, %s982_s29 }
  0x16   :  { %107 = vperm.xlu1 %981, %v53_v22   ;;  %v43_v31 = vld [vmem:[%s1294_s1 + $0x78] sm:$0xff]  ;;  %v58_v32 = vld [vmem:[%s1295_s2 + $0x70] sm:$0xff]  ;;  %v366_v34 = vld [vmem:[%s1297_s4] sm:$0xff] }
  0x17   :  { %v59_v33 = vld [vmem:[%s1295_s2 + $0x78] sm:$0xff]  ;;  %v367_v35 = vld [vmem:[%s1297_s4 + $0x8] sm:$0xff]  ;;  %v368_v36 = vld [vmem:[%s1297_s4 + $0x10] sm:$0xff]  ;;  %p989_p3 = por %p988_p2, %p987_p1 }
  0x18   :  { %820 = vmatmul.mubr.msk.f32.gmra.mrb[10].mxu0 %vm140_vm0, %v39_v23  ;;  %112 = vperm.xlu0 %980, %v54_v25   ;;  %v369_v37 = vld [vmem:[%s1297_s4 + $0x18] sm:$0xff]  ;;  %v370_v38 = vld [vmem:[%s1297_s4 + $0x20] sm:$0xff]  ;;  %v371_v39 = vld [vmem:[%s1297_s4 + $0x28] sm:$0xff] }
  0x19   :  { %822 = vmatprep.mubr.msk.f32.mxu0 %vm140_vm0, %v40_v24  ;;  %v372_v40 = vld [vmem:[%s1297_s4 + $0x30] sm:$0xff]  ;;  %v373_v41 = vld [vmem:[%s1297_s4 + $0x38] sm:$0xff]  ;;  %v374_v42 = vld [vmem:[%s1297_s4 + $0x40] sm:$0xff]  ;;  %p990_p4 = pnand %p989_p3, %p983_p0 }
  0x1a   :  { %117 = vperm.xlu1 %981, %v55_v26   ;;  %v375_v43 = vld [vmem:[%s1297_s4 + $0x48] sm:$0xff]  ;;  %v376_v44 = vld [vmem:[%s1297_s4 + $0x50] sm:$0xff]  ;;  %v377_v45 = vld [vmem:[%s1297_s4 + $0x58] sm:$0xff] }
  0x1b   :  { %v378_v46 = vld [vmem:[%s1297_s4 + $0x60] sm:$0xff]  ;;  %v379_v47 = vld [vmem:[%s1297_s4 + $0x68] sm:$0xff]  ;;  %v380_v48 = vld [vmem:[%s1297_s4 + $0x70] sm:$0xff] }
  0x1c   :  { %823 = vmatmul.mubr.msk.f32.gmra.mrb[12].mxu0 %vm140_vm0, %v41_v27  ;;  %122 = vperm.xlu0 %980, %v56_v29   ;;  %v381_v49 = vld [vmem:[%s1297_s4 + $0x78] sm:$0xff]  ;;  %v624_v50 = vld [vmem:[%s1299_s6] sm:$0xff] }
  0x1d   :  { %825 = vmatprep.mubr.msk.f32.mxu0 %vm140_vm0, %v42_v28  ;;  %v350_v51 = vld [vmem:[%s1296_s3] sm:$0xff] }
  0x1e   :  { %127 = vperm.xlu1 %981, %v57_v30   ;;  %860 = vmatprep.mubr.f32.mxu1 %v350_v51 }
  0x20   :  { %826 = vmatmul.mubr.msk.f32.gmra.mrb[14].mxu0 %vm140_vm0, %v43_v31  ;;  %132 = vperm.xlu0 %980, %v58_v32  }
  0x22   :  { %137 = vperm.xlu1 %981, %v59_v33  }
  0x24   :  { %384 = vperm.xlu0 %980, %v366_v34  }
  0x26   :  { %389 = vperm.xlu1 %981, %v367_v35  }
  0x28   :  { %394 = vperm.xlu0 %980, %v368_v36  }
  0x2a   :  { %399 = vperm.xlu1 %981, %v369_v37  }
  0x2c   :  { %404 = vperm.xlu0 %980, %v370_v38  }
  0x2e   :  { %409 = vperm.xlu1 %981, %v371_v39  }
  0x30   :  { %414 = vperm.xlu0 %980, %v372_v40  }
  0x32   :  { %419 = vperm.xlu1 %981, %v373_v41  }
  0x34   :  { %424 = vperm.xlu0 %980, %v374_v42  }
  0x36   :  { %429 = vperm.xlu1 %981, %v375_v43  }
  0x38   :  { %434 = vperm.xlu0 %980, %v376_v44  }
  0x3a   :  { %439 = vperm.xlu1 %981, %v377_v45  }
  0x3c   :  { %444 = vperm.xlu0 %980, %v378_v46  }
  0x3e   :  { %449 = vperm.xlu1 %981, %v379_v47  }
  0x40   :  { %454 = vperm.xlu0 %980, %v380_v48  }
  0x42   :  { %459 = vperm.xlu1 %981, %v381_v49  }
  0x44   :  { %627 = vperm.xlu0 %980, %v624_v50  }
  0x83   :  { %v63_v53 = vpop.permute.xlu0 %62 }
  0x84   :  { %v73_v52 = vpop.permute.xlu1 %72 }
  0x87   :  { %v68_v55 = vpop.permute.xlu0 %67 }
  0x88   :  { %v78_v54 = vpop.permute.xlu1 %77 }
  0x8b   :  { %v83_v57 = vpop.permute.xlu0 %82 }
  0x8c   :  { %v88_v56 = vpop.permute.xlu1 %87 }
  0x8f   :  { %v93_v3 = vpop.permute.xlu0 %92 }
  0x91   :  { %v98_v63 = vpop.permute.xlu1 %97 }
  0x93   :  { %v103_v16 = vpop.permute.xlu0 %102 }
  0x95   :  { %v108_v13 = vpop.permute.xlu1 %107 }
  0x97   :  { %v113_v28 = vpop.permute.xlu0 %112 }
  0x99   :  { %v118_v25 = vpop.permute.xlu1 %117 }
  0x9b   :  { %v123_v41 = vpop.permute.xlu0 %122 }
  0x9d   :  { %v128_v38 = vpop.permute.xlu1 %127 }
  0xa1   :  { %v138_v50 = vpop.permute.xlu1 %137 }
  0xd7   :  { %v806_v58 = vpop.f32.mrb[0].mxu0 }
  0xd8   :  { %v261_v59 = vadd.f32 %v806_v58, %v68_v55  ;;  %v255_v60 = vpop.f32.mrb[1].mxu0 }
  0xd9   :  { %v256_v61 = vadd.f32 %v255_v60, %v63_v53  ;;  %v133_v53 = vpop.permute.xlu0 %132 }
  0xda   :  { %v335_v62 = vmax.f32 %v261_v59, 0.0 }
  0xdb   :  { %v334_v1 = vmax.f32 %v256_v61, 0.0  ;;  %v809_v2 = vpop.f32.mrb[2].mxu0  ;;  %v351_v61 = vld [vmem:[%s1296_s3 + $0x8] sm:$0xff] }
  0xdc   :  { %v271_v4 = vadd.f32 %v809_v2, %v78_v54  ;;  %v265_v5 = vpop.f32.mrb[3].mxu0  ;;  %v355_v2 = vld [vmem:[%s1296_s3 + $0x28] sm:$0xff] }
  0xdd   :  { %v266_v6 = vadd.f32 %v265_v5, %v73_v52  ;;  %v919_v7 = vpack.c.bf16 %v335_v62, %v334_v1  ;;  %v352_v62 = vld [vmem:[%s1296_s3 + $0x10] sm:$0xff]  ;;  %v354_v1 = vld [vmem:[%s1296_s3 + $0x20] sm:$0xff] }
  0xde   :  { %v337_v8 = vmax.f32 %v271_v4, 0.0  ;;  %v357_v4 = vld [vmem:[%s1296_s3 + $0x38] sm:$0xff]  ;;  %v358_v5 = vld [vmem:[%s1296_s3 + $0x40] sm:$0xff] }
  0xdf   :  { %v336_v9 = vmax.f32 %v266_v6, 0.0  ;;  %v812_v10 = vpop.f32.mrb[4].mxu0  ;;  %920 = vmatprep.subr.bf16.mxu1 %v919_v7  ;;  %v359_v6 = vld [vmem:[%s1296_s3 + $0x48] sm:$0xff] }
  0xe0   :  { %v281_v11 = vadd.f32 %v812_v10, %v88_v56  ;;  %v275_v12 = vpop.f32.mrb[5].mxu0  ;;  %922 = vmatpush3.bf16.msra.mxu1 %v919_v7  ;;  %v360_v7 = vld [vmem:[%s1296_s3 + $0x50] sm:$0xff]  ;;  %v363_v10 = vld [vmem:[%s1296_s3 + $0x68] sm:$0xff] }
  0xe1   :  { %v923_v14 = vpack.c.bf16 %v337_v8, %v336_v9  ;;  %v276_v15 = vadd.f32 %v275_v12, %v83_v57  ;;  %v361_v8 = vld [vmem:[%s1296_s3 + $0x58] sm:$0xff]  ;;  %v362_v9 = vld [vmem:[%s1296_s3 + $0x60] sm:$0xff] }
  0xe2   :  { %v339_v17 = vmax.f32 %v281_v11, 0.0  ;;  %v364_v11 = vld [vmem:[%s1296_s3 + $0x70] sm:$0xff]  ;;  %v365_v12 = vld [vmem:[%s1296_s3 + $0x78] sm:$0xff] }
  0xe3   :  { %v338_v18 = vmax.f32 %v276_v15, 0.0  ;;  %v815_v19 = vpop.f32.mrb[6].mxu0  ;;  %924 = vmatprep.subr.bf16.mxu1 %v923_v14  ;;  %v390_v15 = vpop.permute.xlu1 %389 }
  0xe4   :  { %v291_v20 = vadd.f32 %v815_v19, %v98_v63  ;;  %v285_v21 = vpop.f32.mrb[7].mxu0  ;;  %926 = vmatpush3.bf16.msra.mxu1 %v923_v14  ;;  %v353_v63 = vld [vmem:[%s1296_s3 + $0x18] sm:$0xff]  ;;  %v1009_v14 = vmov 0.0  }
  0xe5   :  { %v927_v22 = vpack.c.bf16 %v339_v17, %v338_v18  ;;  %v286_v23 = vadd.f32 %v285_v21, %v93_v3  ;;  %v356_v3 = vld [vmem:[%s1296_s3 + $0x30] sm:$0xff]  ;;  %916 = vmatprep.mubr.msk.f32.mxu0 %vm1008_vm1, %v1009_v14 }
  0xe6   :  { %v341_v24 = vmax.f32 %v291_v20, 0.0 }
  0xe7   :  { %v340_v26 = vmax.f32 %v286_v23, 0.0  ;;  %v818_v27 = vpop.f32.mrb[8].mxu0  ;;  %928 = vmatprep.subr.bf16.mxu1 %v927_v22  ;;  %v400_v17 = vpop.permute.xlu1 %399 }
  0xe8   :  { %v301_v29 = vadd.f32 %v818_v27, %v108_v13  ;;  %v295_v30 = vpop.f32.mrb[9].mxu0  ;;  %930 = vmatpush3.bf16.msra.mxu1 %v927_v22  ;;  %v1007_v13 = vmov 0.0|0.0  }
  0xe9   :  { %v931_v31 = vpack.c.bf16 %v341_v24, %v340_v26  ;;  %v296_v32 = vadd.f32 %v295_v30, %v103_v16  ;;  %951 = vmatprep.subr.bf16.mxu0 %v1007_v13  ;;  %v385_v16 = vpop.permute.xlu0 %384 }
  0xea   :  { %v343_v33 = vmax.f32 %v301_v29, 0.0 }
  0xeb   :  { %v342_v34 = vmax.f32 %v296_v32, 0.0  ;;  %v821_v35 = vpop.f32.mrb[10].mxu0  ;;  %932 = vmatprep.subr.bf16.mxu1 %v931_v31  ;;  %v410_v19 = vpop.permute.xlu1 %409 }
  0xec   :  { %v311_v36 = vadd.f32 %v821_v35, %v118_v25  ;;  %v305_v37 = vpop.f32.mrb[11].mxu0  ;;  %934 = vmatpush3.bf16.msra.mxu1 %v931_v31 }
  0xed   :  { %v935_v39 = vpack.c.bf16 %v343_v33, %v342_v34  ;;  %v306_v40 = vadd.f32 %v305_v37, %v113_v28  ;;  %v395_v18 = vpop.permute.xlu0 %394 }
  0xee   :  { %v345_v42 = vmax.f32 %v311_v36, 0.0 }
  0xef   :  { %v344_v43 = vmax.f32 %v306_v40, 0.0  ;;  %v824_v44 = vpop.f32.mrb[12].mxu0  ;;  %936 = vmatprep.subr.bf16.mxu1 %v935_v39  ;;  %v420_v26 = vpop.permute.xlu1 %419 }
  0xf0   :  { %v321_v45 = vadd.f32 %v824_v44, %v128_v38  ;;  %v315_v46 = vpop.f32.mrb[13].mxu0  ;;  %938 = vmatpush3.bf16.msra.mxu1 %v935_v39 }
  0xf1   :  { %v939_v47 = vpack.c.bf16 %v345_v42, %v344_v43  ;;  %v316_v48 = vadd.f32 %v315_v46, %v123_v41  ;;  %v405_v20 = vpop.permute.xlu0 %404 }
  0xf2   :  { %v347_v49 = vmax.f32 %v321_v45, 0.0 }
  0xf3   :  { %v346_v51 = vmax.f32 %v316_v48, 0.0  ;;  %v827_v52 = vpop.f32.mrb[14].mxu0  ;;  %940 = vmatprep.subr.bf16.mxu1 %v939_v47  ;;  %v430_v39 = vpop.permute.xlu1 %429 }
  0xf4   :  { %v331_v54 = vadd.f32 %v827_v52, %v138_v50  ;;  %v325_v55 = vpop.f32.mrb[15].mxu0  ;;  %942 = vmatpush3.bf16.msra.mxu1 %v939_v47 }
  0xf5   :  { %v943_v56 = vpack.c.bf16 %v347_v49, %v346_v51  ;;  %v326_v57 = vadd.f32 %v325_v55, %v133_v53  ;;  %v415_v29 = vpop.permute.xlu0 %414 }
  0xf6   :  { %v349_v58 = vmax.f32 %v331_v54, 0.0 }
  0xf7   :  { %v348_v59 = vmax.f32 %v326_v57, 0.0  ;;  %944 = vmatprep.subr.bf16.mxu1 %v943_v56  ;;  %v440_v51 = vpop.permute.xlu1 %439 }
  0xf8   :  { %946 = vmatpush3.bf16.msra.mxu1 %v943_v56 }
  0xf9   :  { %v947_v60 = vpack.c.bf16 %v349_v58, %v348_v59  ;;  %v425_v42 = vpop.permute.xlu0 %424 }
  0xfb   :  { %948 = vmatprep.subr.bf16.mxu1 %v947_v60 }
  0xfc   :  { %950 = vmatpush3.bf16.msra.mxu1 %v947_v60 }
  0xfd   :  { %v435_v54 = vpop.permute.xlu0 %434 }
  0xff   :  { %861 = vmatmul.mubr.f32.vlgmr.msra.gmra.mrb[0].mxu1 %v351_v61 }
 0x100   :  { %863 = vmatprep.mubr.f32.mxu1 %v352_v62 }
 0x103   :  { %864 = vmatmul.mubr.f32.gmra.mrb[2].mxu1 %v353_v63 }
 0x104   :  { %866 = vmatprep.mubr.f32.mxu1 %v354_v1  ;;  %v450_v1 = vpop.permute.xlu1 %449 }
 0x107   :  { %867 = vmatmul.mubr.f32.gmra.mrb[4].mxu1 %v355_v2 }
 0x108   :  { %869 = vmatprep.mubr.f32.mxu1 %v356_v3  ;;  %v460_v14 = vpop.permute.xlu1 %459 }
 0x10b   :  { %870 = vmatmul.mubr.f32.gmra.mrb[6].mxu1 %v357_v4  ;;  %v445_v4 = vpop.permute.xlu0 %444 }
 0x10c   :  { %872 = vmatprep.mubr.f32.mxu1 %v358_v5 }
 0x10f   :  { %873 = vmatmul.mubr.f32.gmra.mrb[8].mxu1 %v359_v6 }
 0x110   :  { %875 = vmatprep.mubr.f32.mxu1 %v360_v7 }
 0x113   :  { %876 = vmatmul.mubr.f32.gmra.mrb[10].mxu1 %v361_v8 }
 0x114   :  { %878 = vmatprep.mubr.f32.mxu1 %v362_v9 }
 0x117   :  { %879 = vmatmul.mubr.f32.gmra.mrb[12].mxu1 %v363_v10 }
 0x118   :  { %881 = vmatprep.mubr.f32.mxu1 %v364_v11 }
 0x11b   :  { %882 = vmatmul.mubr.f32.gmra.mrb[14].mxu1 %v365_v12 }
 0x1d2   :  { %v862_v21 = vpop.f32.mrb[0].mxu1 }
 0x1d3   :  { %v534_v22 = vadd.f32 %v862_v21, %v390_v15  ;;  %v528_v23 = vpop.f32.mrb[1].mxu1 }
 0x1d4   :  { %v529_v24 = vadd.f32 %v528_v23, %v385_v16 }
 0x1d5   :  { %v608_v25 = vmax.f32 %v534_v22, 0.0 }
 0x1d6   :  { %v607_v27 = vmax.f32 %v529_v24, 0.0  ;;  %v865_v28 = vpop.f32.mrb[2].mxu1 }
 0x1d7   :  { %v544_v30 = vadd.f32 %v865_v28, %v400_v17  ;;  %v538_v31 = vpop.f32.mrb[3].mxu1  ;;  %v455_v17 = vpop.permute.xlu0 %454 }
 0x1d8   :  { %v952_v32 = vpack.c.bf16 %v608_v25, %v607_v27  ;;  %v539_v33 = vadd.f32 %v538_v31, %v395_v18  ;;  %v623_v25 = vld [vmem:[%s1298_s5] sm:$0xff] }
 0x1d9   :  { %v610_v34 = vmax.f32 %v544_v30, 0.0 }
 0x1da   :  { %v609_v35 = vmax.f32 %v539_v33, 0.0  ;;  %v868_v36 = vpop.f32.mrb[4].mxu1  ;;  %953 = vmatpush3.bf16.msra.mxu0 %v952_v32 }
 0x1db   :  { %v554_v37 = vadd.f32 %v868_v36, %v410_v19  ;;  %v548_v38 = vpop.f32.mrb[5].mxu1  ;;  %954 = vmatprep.subr.bf16.mxu0 %v1007_v13  ;;  %v628_v28 = vpop.permute.xlu0 %627 }
 0x1dc   :  { %v955_v40 = vpack.c.bf16 %v610_v34, %v609_v35  ;;  %v549_v41 = vadd.f32 %v548_v38, %v405_v20 }
 0x1dd   :  { %v612_v43 = vmax.f32 %v554_v37, 0.0 }
 0x1de   :  { %v611_v44 = vmax.f32 %v549_v41, 0.0  ;;  %v871_v45 = vpop.f32.mrb[6].mxu1  ;;  %956 = vmatpush3.bf16.msra.mxu0 %v955_v40 }
 0x1df   :  { %v564_v46 = vadd.f32 %v871_v45, %v420_v26  ;;  %v558_v47 = vpop.f32.mrb[7].mxu1  ;;  %957 = vmatprep.subr.bf16.mxu0 %v1007_v13  ;;  %v700_v26 = vlaneseq }
 0x1e0   :  { %v958_v48 = vpack.c.bf16 %v612_v43, %v611_v44  ;;  %v559_v49 = vadd.f32 %v558_v47, %v415_v29 }
 0x1e1   :  { %v614_v50 = vmax.f32 %v564_v46, 0.0  ;;  %v701_v27 = vshrl.u32 %v700_v26, 7 }
 0x1e2   :  { %v613_v52 = vmax.f32 %v559_v49, 0.0  ;;  %v874_v53 = vpop.f32.mrb[8].mxu1  ;;  %959 = vmatpush3.bf16.msra.mxu0 %v958_v48 }
 0x1e3   :  { %v574_v55 = vadd.f32 %v874_v53, %v430_v39  ;;  %v568_v56 = vpop.f32.mrb[9].mxu1  ;;  %960 = vmatprep.subr.bf16.mxu0 %v1007_v13  ;;  %vm702_vm2 = vcmp.lt.s32.totalorder %v701_v27, 3 }
 0x1e4   :  { %v961_v57 = vpack.c.bf16 %v614_v50, %v613_v52  ;;  %v569_v58 = vadd.f32 %v568_v56, %v425_v42  ;;  %v703_v30 = vsel %vm702_vm2, %v1054_v0, 0.0 }
 0x1e5   :  { %v616_v59 = vmax.f32 %v574_v55, 0.0 }
 0x1e6   :  { %v615_v60 = vmax.f32 %v569_v58, 0.0  ;;  %v877_v61 = vpop.f32.mrb[10].mxu1  ;;  %962 = vmatpush3.bf16.msra.mxu0 %v961_v57 }
 0x1e7   :  { %v584_v62 = vadd.f32 %v877_v61, %v440_v51  ;;  %v578_v63 = vpop.f32.mrb[11].mxu1  ;;  %963 = vmatprep.subr.bf16.mxu0 %v1007_v13 }
 0x1e8   :  { %v964_v2 = vpack.c.bf16 %v616_v59, %v615_v60  ;;  %v579_v3 = vadd.f32 %v578_v63, %v435_v54 }
 0x1e9   :  { %v618_v5 = vmax.f32 %v584_v62, 0.0 }
 0x1ea   :  { %v617_v6 = vmax.f32 %v579_v3, 0.0  ;;  %v880_v7 = vpop.f32.mrb[12].mxu1  ;;  %965 = vmatpush3.bf16.msra.mxu0 %v964_v2 }
 0x1eb   :  { %v594_v8 = vadd.f32 %v880_v7, %v450_v1  ;;  %v588_v9 = vpop.f32.mrb[13].mxu1  ;;  %966 = vmatprep.subr.bf16.mxu0 %v1007_v13 }
 0x1ec   :  { %v967_v10 = vpack.c.bf16 %v618_v5, %v617_v6  ;;  %v589_v11 = vadd.f32 %v588_v9, %v445_v4 }
 0x1ed   :  { %v620_v12 = vmax.f32 %v594_v8, 0.0 }
 0x1ee   :  { %v619_v15 = vmax.f32 %v589_v11, 0.0  ;;  %v883_v16 = vpop.f32.mrb[14].mxu1  ;;  %968 = vmatpush3.bf16.msra.mxu0 %v967_v10 }
 0x1ef   :  { %v604_v18 = vadd.f32 %v883_v16, %v460_v14  ;;  %v598_v19 = vpop.f32.mrb[15].mxu1  ;;  %969 = vmatprep.subr.bf16.mxu0 %v1007_v13 }
 0x1f0   :  { %v970_v20 = vpack.c.bf16 %v620_v12, %v619_v15  ;;  %v599_v21 = vadd.f32 %v598_v19, %v455_v17 }
 0x1f1   :  { %v622_v22 = vmax.f32 %v604_v18, 0.0 }
 0x1f2   :  { %v621_v23 = vmax.f32 %v599_v21, 0.0  ;;  %971 = vmatpush3.bf16.msra.mxu0 %v970_v20 }
 0x1f3   :  { %972 = vmatprep.subr.bf16.mxu0 %v1007_v13 }
 0x1f4   :  { %v973_v24 = vpack.c.bf16 %v622_v22, %v621_v23 }
 0x1f6   :  { %974 = vmatpush3.bf16.msra.mxu0 %v973_v24 }
 0x1f9   :  { %917 = vmatmul.mubr.f32.vlgmr.msra.gmra.mrb[16].mxu0 %v623_v25 }
 0x2cc   :  { %v696_v29 = vpop.f32.mrb[16].mxu0 }
 0x2cd   :  { %v697_v31 = vadd.f32 %v696_v29, %v628_v28  ;;  %v918_v32 = vpop.f32.mrb[17].mxu0 }
 0x2cf   :  { %v704_v33 = vadd.f32 %v703_v30, %v697_v31 }
 0x2d1   :  { %705 = vst [vmem:[#allocation2] sm:$0xff] %v704_v33 }
 0x2d2   :  { %993 = shalt.err (!%p990_p4)
}
 0x2d3   :  { %s994_s8 = scalar_lea.hbm %s1300_s7, 128 }
 0x2d4   :  { %p995_p5 = scmp.ne.s32.totalorder %s1300_s7, %s994_s8  ;;  %p998_p6 = scmp.lt.u32.totalorder %s994_s8, %s1300_s7 }
 0x2d6   :  { %p1000_p7 = pnand %p998_p6, %p995_p5 }
 0x2d8   :  { %1003 = shalt.err (!%p1000_p7)
}
 0x2d9   :  { %715 = dma.vmem_to_hbm [thread:$0]  %s713_s28, 128, %s1300_s7, [#allocation3]  }
 0x2da   :  { %1004 = dma.done.wait [#allocation3], 128  }
 0x2db   :  { %1005 = vsyncadd [#allocation3], 4294967168 }
 0x2dc   :  { %719 = vsyncpa [#allocation3], 1 }

</bundles_post_ra>
